<compile_context>
chip_gen: v5e
topology: v5e:2x2
jax: 0.10.0
libtpu: 0.0.40
codegen_flags: <defaults>
</compile_context>

<pallas_src>
import itertools

import jax
import jax.numpy as jnp
from jax.experimental import pallas as pl
from jax.experimental.pallas import tpu as pltpu


def afm_kernel(p_ref, q_ref, watt_ref, wp_ref, h2_ref, bias_ref, out_ref):
    # bf16 loads -> f32 elementwise product (v5e has no bf16 VALU), then bf16 as the
    # MXU operand dtype (native bf16 matmul with f32 accumulation on all gens).
    bi = p_ref[...].astype(jnp.float32) * q_ref[...].astype(jnp.float32)  # (TB, P*E)
    bi16 = bi.astype(jnp.bfloat16)

    # Block-diagonal packed weights turn the per-pair contractions into plain 2D
    # matmuls over the lane-dense (TB, P*E) slab:
    #   s[b, a*P + p] = bi[b, p, :] . attention_W[:, a]
    #   v[b, p]       = bi[b, p, :] . projection_p
    s = jnp.dot(bi16, watt_ref[...], preferred_element_type=jnp.float32)  # (TB, A*P)
    v = jnp.dot(bi16, wp_ref[...], preferred_element_type=jnp.float32)    # (TB, P)

    att = jnp.maximum(s + bias_ref[...], 0.0)                             # relu(s + b)
    #   logits[b, p] = sum_a projection_h[a] * att[b, a*P + p]
    logits = jnp.dot(att.astype(jnp.bfloat16), h2_ref[...],
                     preferred_element_type=jnp.float32)                  # (TB, P)

    # Numerically stable softmax over the pair axis fused with the final projection:
    #   out_b = sum_p softmax(logits)_p * v_p
    m = jnp.max(logits, axis=-1, keepdims=True)                           # (TB, 1)
    e = jnp.exp(logits - m)                                               # (TB, P)
    denom = jnp.sum(e, axis=-1, keepdims=True)                            # (TB, 1)
    num = jnp.sum(e * v, axis=-1, keepdims=True)                          # (TB, 1)
    # TODO(synk): dropout on attention_output is identity (eval mode / dropout=0.0);
    # a training-mode dropout mask is not implemented.
    out_ref[...] = num * pl.reciprocal(denom, approx=False)               # (TB, 1)


def afm_layer(p, q, attention_W, attention_b, projection_h, projection_p,
              *, block_b=2048):
    """AFMLayer forward given pairwise field embeddings p, q of shape (B, P, E)."""
    B, P, E = p.shape
    A = attention_W.shape[1]
    f32, bf16 = jnp.float32, jnp.bfloat16

    # Lane-dense bf16 input slabs (B, P*E): the reshape collapses contiguous minor
    # dims (free); bf16 halves the dominant HBM read.  In a full model the upstream
    # embedding output would already be bf16 (here the cast is a tiny wrapper op).
    p2 = p.reshape(B, P * E).astype(bf16)
    q2 = q.reshape(B, P * E).astype(bf16)

    # Block-diagonal packed weights (tiny, resident across all grid steps).
    eye = jnp.eye(P, dtype=f32)
    #   watt[p*E + e, a*P + r] = W[e, a] * delta(p, r)
    watt = (attention_W.astype(f32)[None, :, :, None] * eye[:, None, None, :]
            ).reshape(P * E, A * P).astype(bf16)
    #   wp[p*E + e, r]         = projection_p[e] * delta(p, r)
    wp = (projection_p.astype(f32).reshape(E)[None, :, None] * eye[:, None, :]
          ).reshape(P * E, P).astype(bf16)
    #   h2[a*P + p, r]         = projection_h[a] * delta(p, r)
    h2 = (projection_h.astype(f32).reshape(A)[:, None, None] * eye[None, :, :]
          ).reshape(A * P, P).astype(bf16)
    #   bias_row[0, a*P + r]   = attention_b[a]   (kept in f32)
    bias_row = jnp.repeat(attention_b.astype(f32), P).reshape(1, A * P)

    # Batch tiling: large tiles amortize the ~0.35 us per-grid-step overhead; keep at
    # least 2 balanced steps when possible so v7x megacore has work for both TCs.
    tb = min(block_b, B)
    if B >= 16 and pl.cdiv(B, tb) < 2:
        tb = ((B + 1) // 2 + 7) // 8 * 8      # ceil(B/2), sublane(8)-aligned
    nb = pl.cdiv(B, tb)

    return pl.pallas_call(
        afm_kernel,
        out_shape=jax.ShapeDtypeStruct((B, 1), jnp.float32),
        grid=(nb,),
        in_specs=[
            pl.BlockSpec((tb, P * E), lambda i: (i, 0)),      # p  (batch-tiled, bf16)
            pl.BlockSpec((tb, P * E), lambda i: (i, 0)),      # q  (batch-tiled, bf16)
            pl.BlockSpec((P * E, A * P), lambda i: (0, 0)),   # Watt (resident)
            pl.BlockSpec((P * E, P), lambda i: (0, 0)),       # Wp   (resident)
            pl.BlockSpec((A * P, P), lambda i: (0, 0)),       # H2   (resident)
            pl.BlockSpec((1, A * P), lambda i: (0, 0)),       # bias row (resident)
        ],
        out_specs=pl.BlockSpec((tb, 1), lambda i: (i, 0)),    # (B, 1) directly
        compiler_params=pltpu.CompilerParams(
            dimension_semantics=("parallel",),                # megacore on v7x
            vmem_limit_bytes=32 * 1024 * 1024),               # raises v5e's 16 MiB
    )(p2, q2, watt, wp, h2, bias_row)


# ----------------------------- references / glue -----------------------------

def afm_reference(p, q, attention_W, attention_b, projection_h, projection_p):
    """Pure f32 reference of the PyTorch forward (highest matmul precision)."""
    bi = p * q
    attn = jax.nn.relu(
        jnp.einsum("bpe,ea->bpa", bi, attention_W, precision="highest")
        + attention_b)
    logits = jnp.einsum("bpa,al->bpl", attn, projection_h, precision="highest")
    score = jax.nn.softmax(logits, axis=1)
    att_out = jnp.sum(score * bi, axis=1)
    return jnp.matmul(att_out, projection_p, precision="highest")


def afm_reference_bf16(p, q, attention_W, attention_b, projection_h, projection_p):
    """Reference mirroring the kernel's bf16 operand quantization (f32 accumulate)."""
    f32, bf = jnp.float32, jnp.bfloat16
    q16 = lambda x: x.astype(bf).astype(f32)
    bi = q16(q16(p) * q16(q))
    s = jnp.einsum("bpe,ea->bpa", bi, q16(attention_W), precision="highest")
    v = jnp.einsum("bpe,e->bp", bi, q16(projection_p[:, 0]), precision="highest")
    att = q16(jax.nn.relu(s + attention_b.astype(f32)))
    logits = jnp.einsum("bpa,a->bp", att, q16(projection_h[:, 0]),
                        precision="highest")
    score = jax.nn.softmax(logits, axis=1)
    return jnp.sum(score * v, axis=1, keepdims=True)


def xavier_normal(key, shape):
    fan_in, fan_out = shape
    std = (2.0 / (fan_in + fan_out)) ** 0.5
    return std * jax.random.normal(key, shape, dtype=jnp.float32)


def build_pairs(embed_vec_list):
    """Pairwise row/col concatenation, exactly as the module's forward does."""
    rows, cols = [], []
    for r, c in itertools.combinations(range(len(embed_vec_list)), 2):
        rows.append(embed_vec_list[r])
        cols.append(embed_vec_list[c])
    return jnp.concatenate(rows, axis=1), jnp.concatenate(cols, axis=1)  # (B, P, E)


if __name__ == "__main__":
    B, F_FIELDS, E, A = 2, 5, 32, 4          # 5 fields -> P = 10 pairs
    key = jax.random.PRNGKey(0)
    k_emb, k_w, k_h, k_p, k_big, k_b2 = jax.random.split(key, 6)

    embeds = jax.random.normal(k_emb, (F_FIELDS, B, 1, E), dtype=jnp.float32)
    p, q = build_pairs([embeds[f] for f in range(F_FIELDS)])

    attention_W = xavier_normal(k_w, (E, A))
    attention_b = jnp.zeros((A,), dtype=jnp.float32)      # module's init
    projection_h = xavier_normal(k_h, (A, 1))
    projection_p = xavier_normal(k_p, (E, 1))
    params = (attention_W, attention_b, projection_h, projection_p)

    out = jax.block_until_ready(afm_layer(p, q, *params))
    assert out.shape == (B, 1)
    ref_q = afm_reference_bf16(p, q, *params)             # mirrors bf16 quantization
    ref_f = afm_reference(p, q, *params)                  # pure f32 module forward
    assert jnp.allclose(out, ref_q, atol=1e-2, rtol=1e-2), (out, ref_q)
    assert jnp.allclose(out, ref_f, atol=2e-1, rtol=2e-1), (out, ref_f)

    # Larger, non-tile-aligned batch with a nonzero bias: exercises the multi-step
    # "parallel" grid, resident packed weights, and the ragged last block (no
    # wrapper-side padding pass).
    B2 = 300
    embeds2 = jax.random.normal(k_big, (F_FIELDS, B2, 1, E), dtype=jnp.float32)
    p2, q2 = build_pairs([embeds2[f] for f in range(F_FIELDS)])
    attention_b2 = 0.1 * jax.random.normal(k_b2, (A,), dtype=jnp.float32)
    params2 = (attention_W, attention_b2, projection_h, projection_p)

    out2 = jax.block_until_ready(afm_layer(p2, q2, *params2))
    assert out2.shape == (B2, 1)
    ref2_q = afm_reference_bf16(p2, q2, *params2)
    ref2_f = afm_reference(p2, q2, *params2)
    assert jnp.allclose(out2, ref2_q, atol=1e-2, rtol=1e-2)
    assert jnp.allclose(out2, ref2_f, atol=2e-1, rtol=2e-1)

    print("KERNEL_OK")
</pallas_src>

<mosaic_0001>
module attributes {stable_mosaic.version = 11 : i64} {
  func.func @afm_kernel(%arg0: i32, %arg1: memref<2x320xbf16, #tpu.memory_space<vmem>>, %arg2: memref<2x320xbf16, #tpu.memory_space<vmem>>, %arg3: memref<320x40xbf16, #tpu.memory_space<vmem>>, %arg4: memref<320x10xbf16, #tpu.memory_space<vmem>>, %arg5: memref<40x10xbf16, #tpu.memory_space<vmem>>, %arg6: memref<1x40xf32, #tpu.memory_space<vmem>>, %arg7: memref<2x1xf32, #tpu.memory_space<vmem>>) attributes {dimension_semantics = [#tpu.dimension_semantics<parallel>], iteration_bounds = array<i64: 1>, scalar_prefetch = 0 : i64, scratch_operands = 0 : i64, tpu.core_type = #tpu.core_type<tc>, window_params = [{transform_indices = @transform_0, window_bounds = array<i64: 2, 320>}, {transform_indices = @transform_1, window_bounds = array<i64: 2, 320>}, {pipeline_mode = #tpu.pipeline_mode<synchronous>, transform_indices = @transform_2, window_bounds = array<i64: 320, 40>}, {pipeline_mode = #tpu.pipeline_mode<synchronous>, transform_indices = @transform_3, window_bounds = array<i64: 320, 10>}, {pipeline_mode = #tpu.pipeline_mode<synchronous>, transform_indices = @transform_4, window_bounds = array<i64: 40, 10>}, {pipeline_mode = #tpu.pipeline_mode<synchronous>, transform_indices = @transform_5, window_bounds = array<i64: 1, 40>}, {transform_indices = @transform_6, window_bounds = array<i64: 2, 1>}]} {
    %c0 = arith.constant 0 : index
    %c0_0 = arith.constant 0 : index
    %0 = vector.load %arg1[%c0, %c0_0] : memref<2x320xbf16, #tpu.memory_space<vmem>>, vector<2x320xbf16>
    %1 = arith.extf %0 : vector<2x320xbf16> to vector<2x320xf32>
    %c0_1 = arith.constant 0 : index
    %c0_2 = arith.constant 0 : index
    %2 = vector.load %arg2[%c0_1, %c0_2] : memref<2x320xbf16, #tpu.memory_space<vmem>>, vector<2x320xbf16>
    %3 = arith.extf %2 : vector<2x320xbf16> to vector<2x320xf32>
    %4 = arith.mulf %1, %3 : vector<2x320xf32>
    %5 = arith.truncf %4 : vector<2x320xf32> to vector<2x320xbf16>
    %c0_3 = arith.constant 0 : index
    %c0_4 = arith.constant 0 : index
    %6 = vector.load %arg3[%c0_3, %c0_4] : memref<320x40xbf16, #tpu.memory_space<vmem>>, vector<320x40xbf16>
    %cst = arith.constant dense<0.000000e+00> : vector<2x40xf32>
    %7 = tpu.matmul %5, %6, %cst {dimension_numbers = #tpu.dot_dimension_numbers<[1], [0], [0], [1], [0, 0, 1, 1], [], []>} : vector<2x320xbf16>, vector<320x40xbf16>, vector<2x40xf32> -> vector<2x40xf32>
    %c0_5 = arith.constant 0 : index
    %c0_6 = arith.constant 0 : index
    %8 = vector.load %arg4[%c0_5, %c0_6] : memref<320x10xbf16, #tpu.memory_space<vmem>>, vector<320x10xbf16>
    %cst_7 = arith.constant dense<0.000000e+00> : vector<2x10xf32>
    %9 = tpu.matmul %5, %8, %cst_7 {dimension_numbers = #tpu.dot_dimension_numbers<[1], [0], [0], [1], [0, 0, 1, 1], [], []>} : vector<2x320xbf16>, vector<320x10xbf16>, vector<2x10xf32> -> vector<2x10xf32>
    %c0_8 = arith.constant 0 : index
    %c0_9 = arith.constant 0 : index
    %10 = vector.load %arg6[%c0_8, %c0_9] : memref<1x40xf32, #tpu.memory_space<vmem>>, vector<1x40xf32>
    %11 = vector.broadcast %10 : vector<1x40xf32> to vector<2x40xf32>
    %12 = arith.addf %7, %11 : vector<2x40xf32>
    %cst_10 = arith.constant 0.000000e+00 : f32
    %13 = vector.broadcast %cst_10 : f32 to vector<2x40xf32>
    %14 = arith.maximumf %12, %13 : vector<2x40xf32>
    %15 = arith.truncf %14 : vector<2x40xf32> to vector<2x40xbf16>
    %c0_11 = arith.constant 0 : index
    %c0_12 = arith.constant 0 : index
    %16 = vector.load %arg5[%c0_11, %c0_12] : memref<40x10xbf16, #tpu.memory_space<vmem>>, vector<40x10xbf16>
    %cst_13 = arith.constant dense<0.000000e+00> : vector<2x10xf32>
    %17 = tpu.matmul %15, %16, %cst_13 {dimension_numbers = #tpu.dot_dimension_numbers<[1], [0], [0], [1], [0, 0, 1, 1], [], []>} : vector<2x40xbf16>, vector<40x10xbf16>, vector<2x10xf32> -> vector<2x10xf32>
    %cst_14 = arith.constant dense<0xFF800000> : vector<2xf32>
    %18 = vector.multi_reduction <maximumf>, %17, %cst_14 [1] : vector<2x10xf32> to vector<2xf32>
    %19 = vector.shape_cast %18 : vector<2xf32> to vector<2x1xf32>
    %20 = vector.broadcast %19 : vector<2x1xf32> to vector<2x10xf32>
    %21 = arith.subf %17, %20 : vector<2x10xf32>
    %22 = math.exp %21 : vector<2x10xf32>
    %cst_15 = arith.constant dense<0.000000e+00> : vector<2xf32>
    %23 = vector.multi_reduction <add>, %22, %cst_15 [1] : vector<2x10xf32> to vector<2xf32>
    %24 = vector.shape_cast %23 : vector<2xf32> to vector<2x1xf32>
    %25 = arith.mulf %22, %9 : vector<2x10xf32>
    %cst_16 = arith.constant dense<0.000000e+00> : vector<2xf32>
    %26 = vector.multi_reduction <add>, %25, %cst_16 [1] : vector<2x10xf32> to vector<2xf32>
    %27 = vector.shape_cast %26 : vector<2xf32> to vector<2x1xf32>
    %28 = tpu.reciprocal %24 : vector<2x1xf32> -> vector<2x1xf32>
    %29 = arith.mulf %27, %28 : vector<2x1xf32>
    %c0_17 = arith.constant 0 : index
    %c0_18 = arith.constant 0 : index
    %30 = vector.load %arg7[%c0_17, %c0_18] : memref<2x1xf32, #tpu.memory_space<vmem>>, vector<2x1xf32>
    tpu.vector_store %arg7[%c0_17, %c0_18], %29 {strides = array<i32>} : memref<2x1xf32, #tpu.memory_space<vmem>>, vector<2x1xf32>,
    return
  }
  func.func @transform_0(%arg0: i32) -> (i32, i32) {
    %c0_i32 = arith.constant 0 : i32
    %c0_i32_0 = arith.constant 0 : i32
    return %arg0, %c0_i32 : i32, i32
  }
  func.func @transform_1(%arg0: i32) -> (i32, i32) {
    %c0_i32 = arith.constant 0 : i32
    %c0_i32_0 = arith.constant 0 : i32
    return %arg0, %c0_i32 : i32, i32
  }
  func.func @transform_2(%arg0: i32) -> (i32, i32) {
    %c0_i32 = arith.constant 0 : i32
    %c0_i32_0 = arith.constant 0 : i32
    %c0_i32_1 = arith.constant 0 : i32
    return %c0_i32, %c0_i32_0 : i32, i32
  }
  func.func @transform_3(%arg0: i32) -> (i32, i32) {
    %c0_i32 = arith.constant 0 : i32
    %c0_i32_0 = arith.constant 0 : i32
    %c0_i32_1 = arith.constant 0 : i32
    return %c0_i32, %c0_i32_0 : i32, i32
  }
  func.func @transform_4(%arg0: i32) -> (i32, i32) {
    %c0_i32 = arith.constant 0 : i32
    %c0_i32_0 = arith.constant 0 : i32
    %c0_i32_1 = arith.constant 0 : i32
    return %c0_i32, %c0_i32_0 : i32, i32
  }
  func.func @transform_5(%arg0: i32) -> (i32, i32) {
    %c0_i32 = arith.constant 0 : i32
    %c0_i32_0 = arith.constant 0 : i32
    %c0_i32_1 = arith.constant 0 : i32
    return %c0_i32, %c0_i32_0 : i32, i32
  }
  func.func @transform_6(%arg0: i32) -> (i32, i32) {
    %c0_i32 = arith.constant 0 : i32
    %c0_i32_0 = arith.constant 0 : i32
    return %arg0, %c0_i32 : i32, i32
  }
}

</mosaic_0001>

<bundles_post_ra>
// kernel: tpu_custom_call.1
= control target key start
LH: loop header
LB: loop body
LE: loop exit
PB: predicated region body
PF: predicated region fallthrough
CT: control target
= control target key end

     0   :  { %vm240_vm0 = vcmask 523264   ;;  %vm472_vm1 = vcmask 1043456   ;;  %vm468_vm2 = vcmask 326656   ;;  %vm489_vm3 = vcmask 74752   ;;  %s920_s3 = inlined_call_operand.vmem [shape: bf16[320,10], index: 3, kind: input, shape index: {}]   ;;  %s921_s2 = inlined_call_operand.vmem [shape: bf16[320,40], index: 2, kind: input, shape index: {}]   ;;  %s922_s0 = inlined_call_operand.vmem [shape: bf16[2,320], index: 0, kind: input, shape index: {}]   ;;  %s923_s1 = inlined_call_operand.vmem [shape: bf16[2,320], index: 1, kind: input, shape index: {}]   ;;  %s924_s5 = inlined_call_operand.vmem [shape: f32[1,40], index: 5, kind: input, shape index: {}]   ;;  %s925_s4 = inlined_call_operand.vmem [shape: bf16[40,10], index: 4, kind: input, shape index: {}]   ;;  %s926_s6 = inlined_call_operand.vmem [shape: f32[2,1], index: 6, kind: output, shape index: {}]  }
   0x1   :  { %v722_v0 = vld [vmem:[%s920_s3 + $0x38] sm:$0xff]  ;;  %v721_v4 = vld [vmem:[%s920_s3 + $0x30] sm:$0xff]  ;;  %v720_v8 = vld [vmem:[%s920_s3 + $0x28] sm:$0xff]  ;;  %vm518_vm8 = vcmask 1024  }
   0x2   :  { %v734_v1 = vld [vmem:[%s920_s3 + $0x98] sm:$0xff]  ;;  %244 = vmatpush.bf16.msra.mxu0 %v722_v0  ;;  %v733_v5 = vld [vmem:[%s920_s3 + $0x90] sm:$0xff]  ;;  %v732_v9 = vld [vmem:[%s920_s3 + $0x88] sm:$0xff] }
   0x3   :  { %v730_v2 = vld [vmem:[%s920_s3 + $0x78] sm:$0xff]  ;;  %274 = vmatpush.bf16.msra.mxu2 %v734_v1  ;;  %v729_v6 = vld [vmem:[%s920_s3 + $0x70] sm:$0xff]  ;;  %v728_v10 = vld [vmem:[%s920_s3 + $0x68] sm:$0xff] }
   0x4   :  { %v702_v3 = vld [vmem:[%s921_s2 + $0x38] sm:$0xff]  ;;  %257 = vmatpush.bf16.msra.mxu1 %v730_v2  ;;  %v701_v7 = vld [vmem:[%s921_s2 + $0x30] sm:$0xff]  ;;  %v700_v11 = vld [vmem:[%s921_s2 + $0x28] sm:$0xff] }
   0x5   :  { %407 = vmatpush.bf16.msra.mxu3 %v702_v3  ;;  %v24_v12 = vld [vmem:[%s922_s0] sm:$0x7]  ;;  %v710_v20 = vld [vmem:[%s921_s2 + $0x78] sm:$0xff]  ;;  %v709_v24 = vld [vmem:[%s921_s2 + $0x70] sm:$0xff] }
   0x6   :  { %245 = vmatpush.bf16.msra.mxu0 %v721_v4  ;;  %v26_v13 = vld [vmem:[%s923_s1] sm:$0x7]  ;;  %v25_v14 = vunpack.c.l.bf16 %v24_v12  ;;  %v718_v22 = vld [vmem:[%s920_s3 + $0x18] sm:$0xff]  ;;  %v717_v26 = vld [vmem:[%s920_s3 + $0x10] sm:$0xff] }
   0x7   :  { %275 = vmatpush.bf16.msra.mxu2 %v733_v5  ;;  %v27_v15 = vunpack.c.l.bf16 %v26_v13  ;;  %v719_v16 = vld [vmem:[%s920_s3 + $0x20] sm:$0xff]  ;;  %v726_v23 = vld [vmem:[%s920_s3 + $0x58] sm:$0xff]  ;;  %v725_v28 = vld [vmem:[%s920_s3 + $0x50] sm:$0xff] }
   0x8   :  { %258 = vmatpush.bf16.msra.mxu1 %v729_v6  ;;  %v731_v17 = vld [vmem:[%s920_s3 + $0x80] sm:$0xff]  ;;  %v698_v25 = vld [vmem:[%s921_s2 + $0x18] sm:$0xff]  ;;  %v708_v29 = vld [vmem:[%s921_s2 + $0x68] sm:$0xff] }
   0x9   :  { %408 = vmatpush.bf16.msra.mxu3 %v701_v7  ;;  %v28_v18 = vmul.f32 %v27_v15, %v25_v14  ;;  %v727_v19 = vld [vmem:[%s920_s3 + $0x60] sm:$0xff]  ;;  %v697_v31 = vld [vmem:[%s921_s2 + $0x10] sm:$0xff]  ;;  %v716_v32 = vld [vmem:[%s920_s3 + $0x8] sm:$0xff] }
   0xa   :  { %246 = vmatpush.bf16.msra.mxu0 %v720_v8  ;;  %v699_v21 = vld [vmem:[%s921_s2 + $0x20] sm:$0xff]  ;;  %v724_v33 = vld [vmem:[%s920_s3 + $0x48] sm:$0xff]  ;;  %v706_v39 = vld [vmem:[%s921_s2 + $0x58] sm:$0xff] }
   0xb   :  { %276 = vmatpush.bf16.msra.mxu2 %v732_v9  ;;  %30 = vst [vmem:[#allocation1] ss:$4 sm:$0xff] %v28_v18  ;;  %v707_v34 = vld [vmem:[%s921_s2 + $0x60] sm:$0xff]  ;;  %v696_v35 = vld [vmem:[%s921_s2 + $0x8] sm:$0xff]  ;;  %v714_v42 = vld [vmem:[%s921_s2 + $0x98] sm:$0xff] }
   0xc   :  { %259 = vmatpush.bf16.msra.mxu1 %v728_v10  ;;  %v715_v36 = vld [vmem:[%s920_s3] sm:$0xff]  ;;  %v705_v45 = vld [vmem:[%s921_s2 + $0x50] sm:$0xff]  ;;  %v704_v47 = vld [vmem:[%s921_s2 + $0x48] sm:$0xff] }
   0xd   :  { %409 = vmatpush.bf16.msra.mxu3 %v700_v11  ;;  %v723_v38 = vld [vmem:[%s920_s3 + $0x40] sm:$0xff]  ;;  %v713_v46 = vld [vmem:[%s921_s2 + $0x90] sm:$0xff]  ;;  %v712_v48 = vld [vmem:[%s921_s2 + $0x88] sm:$0xff] }
   0xe   :  { %247 = vmatpush.bf16.msra.mxu0 %v719_v16  ;;  %v695_v41 = vld [vmem:[%s921_s2] sm:$0xff]  ;;  %v452_v51 = vld [vmem:[%s925_s4 + $0x10] sm:$0xf]  ;;  %v736_v55 = vld [vmem:[%s925_s4 + $0x8] sm:$0xff] }
   0xf   :  { %277 = vmatpush.bf16.msra.mxu2 %v731_v17  ;;  %v703_v49 = vld [vmem:[%s921_s2 + $0x40] sm:$0xff]  ;;  %v462_v52 = vunpack.c.l.b16 %v452_v51 }
  0x10   :  { %260 = vmatpush.bf16.msra.mxu1 %v727_v19  ;;  %v711_v50 = vld [vmem:[%s921_s2 + $0x80] sm:$0xff] }
  0x11   :  { %410 = vmatpush.bf16.msra.mxu3 %v699_v21  ;;  %v465_v53 = vpack.c.b16 %v462_v52, %v462_v52  ;;  %v735_v56 = vld [vmem:[%s925_s4] sm:$0xff] }
  0x12   :  { %248 = vmatpush.bf16.msra.mxu0 %v718_v22  ;;  %v33_v27 = vld.sshfl [vmem:[#allocation1 + $0x10] sm:$0xff pattern:$0x73625140]  ;;  %v31_v37 = vld.sshfl [vmem:[#allocation1] sm:$0xff pattern:$0x73625140] }
  0x13   :  { %420 = vmatpush.bf16.msrb.mxu2 %v710_v20  ;;  %v39_v30 = vpack.c.bf16 %v33_v27, %v33_v27  ;;  %v32_v40 = vld.sshfl [vmem:[#allocation1 + $0x8] sm:$0xff pattern:$0x73625140]  ;;  %v37_v43 = vpack.c.bf16 %v31_v37, %v31_v37  ;;  %v474_v54 = vsel %vm472_vm1, %v465_v53, 0  ;;  %v737_v2 = vld [vmem:[%s924_s5] ss:$0 sm:$0xff] }
  0x14   :  { %261 = vmatpush.bf16.msra.mxu1 %v726_v23  ;;  %v38_v44 = vpack.c.bf16 %v32_v40, %v32_v40 }
  0x15   :  { %411 = vmatpush.bf16.msra.mxu3 %v698_v25  ;;  %604 = vmatmul.msk.bf16.vlgmr.msra.gmra.mxu2 %vm240_vm0, %v39_v30 }
  0x16   :  { %249 = vmatpush.bf16.msra.mxu0 %v717_v26 }
  0x17   :  { %421 = vmatpush.bf16.msrb.mxu2 %v709_v24 }
  0x18   :  { %262 = vmatpush.bf16.msra.mxu1 %v725_v28 }
  0x19   :  { %412 = vmatpush.bf16.msra.mxu3 %v697_v31 }
  0x1a   :  { %250 = vmatpush.bf16.msra.mxu0 %v716_v32 }
  0x1b   :  { %422 = vmatpush.bf16.msrb.mxu2 %v708_v29 }
  0x1c   :  { %263 = vmatpush.bf16.msra.mxu1 %v724_v33 }
  0x1d   :  { %413 = vmatpush.bf16.msra.mxu3 %v696_v35 }
  0x1e   :  { %251 = vmatpush.bf16.msra.mxu0 %v715_v36 }
  0x1f   :  { %423 = vmatpush.bf16.msrb.mxu2 %v707_v34 }
  0x20   :  { %264 = vmatpush.bf16.msra.mxu1 %v723_v38 }
  0x21   :  { %414 = vmatpush.bf16.msra.mxu3 %v695_v41  ;;  %252 = vmatmul.bf16.vlgmr.msra.gmra.mxu0 %v37_v43 }
  0x22   :  { %437 = vmatpush.bf16.msrb.mxu0 %v714_v42 }
  0x23   :  { %424 = vmatpush.bf16.msrb.mxu2 %v706_v39  ;;  %265 = vmatmul.bf16.vlgmr.msra.gmra.mxu1 %v38_v44 }
  0x24   :  { %415 = vmatmul.bf16.vlgmr.msra.gmra.mxu3 %v37_v43  ;;  %481 = vmatpush.bf16.msrb.mxu1 %v474_v54 }
  0x26   :  { %438 = vmatpush.bf16.msrb.mxu0 %v713_v46 }
  0x27   :  { %425 = vmatpush.bf16.msrb.mxu2 %v705_v45 }
  0x28   :  { %482 = vmatpush.bf16.msrb.mxu1 %v736_v55 }
  0x2a   :  { %439 = vmatpush.bf16.msrb.mxu0 %v712_v48 }
  0x2b   :  { %426 = vmatpush.bf16.msrb.mxu2 %v704_v47 }
  0x2c   :  { %483 = vmatpush.bf16.msrb.mxu1 %v735_v56 }
  0x2e   :  { %440 = vmatpush.bf16.msrb.mxu0 %v711_v50 }
  0x2f   :  { %427 = vmatpush.bf16.msrb.mxu2 %v703_v49 }
  0x31   :  { %685 = vmatmul.msk.bf16.vlgmr.msrb.gmra.mxu0 %vm240_vm0, %v39_v30 }
  0x32   :  { %428 = vmatmul.bf16.vlgmr.msrb.gmra.mxu2 %v38_v44 }
  0x98   :  { %v279_v57 = vpop.f32.mrf.mxu2 }
  0x9e   :  { %v253_v58 = vpop.f32.mrf.mxu0 }
  0xa0   :  { %v266_v59 = vpop.f32.mrf.mxu1  ;;  %v281_v61 = vpop.f32.mrf.mxu2 }
  0xa1   :  { %v267_v60 = vadd.f32 %v266_v59, %v253_v58 }
  0xa3   :  { %v280_v62 = vadd.f32 %v279_v57, %v267_v60 }
  0xa6   :  { %v255_v63 = vpop.f32.mrf.mxu0 }
  0xa7   :  { %v416_v0 = vpop.f32.mrf.mxu3 }
  0xa8   :  { %v268_v1 = vpop.f32.mrf.mxu1  ;;  %v417_v3 = vadd.f32 %v737_v2, %v416_v0 }
  0xae   :  { %v442_v4 = vpop.f32.mrf.mxu0 }
  0xaf   :  { %v418_v5 = vpop.f32.mrf.mxu3 }
  0xb5   :  { %v429_v6 = vpop.f32.mrf.mxu2 }
  0xb6   :  { %v430_v7 = vadd.f32 %v429_v6, %v417_v3  ;;  %v444_v10 = vpop.f32.mrf.mxu0 }
  0xb8   :  { %v443_v8 = vadd.f32 %v442_v4, %v430_v7 }
  0xba   :  { %v446_v9 = vmax.f32 %v443_v8, 0.0 }
  0xbc   :  { %v447_v11 = vpack.c.bf16 %v446_v9, %v446_v9 }
  0xbd   :  { %v431_v12 = vpop.f32.mrf.mxu2 }
  0xbe   :  { %694 = vmatmul.msk.bf16.vlgmr.msrb.gmra.mxu1 %vm468_vm2, %v447_v11 }
 0x13b   :  { %v485_v13 = vpop.f32.mrf.mxu1 }
 0x13c   :  { %v490_v14 = vsel %vm489_vm3, %v485_v13, -inf }
 0x13d   :  { %491 = vmax.xlane.f32.xlu0 %v490_v14 }
 0x143   :  { %v487_v15 = vpop.f32.mrf.mxu1 }
 0x1b0   :  { %v492_v16 = vpop.xlane.xlu0 %491 }
 0x1b1   :  { %v493_v17 = vsub.f32 %v485_v13, %v492_v16 }
 0x1b3   :  { %v494_v18 = vmul.f32 1.442695, %v493_v17 }
 0x1b5   :  { %738 = vpow2.f32 %v494_v18 }
 0x1bb   :  { %v739_v19 = vpop.eup %738 }
 0x1bc   :  { %v496_v20 = vsel %vm489_vm3, %v739_v19, 0.0  ;;  %v499_v21 = vmul.f32 %v739_v19, %v280_v62 }
 0x1bd   :  { %497 = vadd.xlane.f32.xlu0 %v496_v20 }
 0x1be   :  { %v500_v22 = vsel %vm489_vm3, %v499_v21, 0.0 }
 0x1bf   :  { %501 = vadd.xlane.f32.xlu1 %v500_v22 }
 0x230   :  { %v498_v23 = vpop.xlane.xlu0 %497 }
 0x231   :  { %740 = vrcp.f32 %v498_v23  ;;  %v514_v27 = vand.u32 2147483648, %v498_v23  ;;  %v512_v29 = vand.u32 2147483647, %v498_v23  ;;  %vm508_vm5 = vweird.f32 %v498_v23 }
 0x232   :  { %v502_v33 = vpop.xlane.xlu1 %501 }
 0x233   :  { %v515_v31 = vor.u32 1.1754944e-38, %v514_v27  ;;  %vm513_vm7 = vcmp.eq.f32.partialorder %v512_v29, 8.507059e+37 }
 0x237   :  { %v741_v24 = vpop.eup %740 }
 0x238   :  { %v504_v25 = vmul.f32 %v741_v24, %v498_v23  ;;  %vm509_vm4 = vweird.f32 %v741_v24 }
 0x239   :  { %vm510_vm6 = vmor %vm508_vm5, %vm509_vm4 }
 0x23a   :  { %v505_v26 = vsub.f32 1.0, %v504_v25 }
 0x23c   :  { %v506_v28 = vmul.f32 %v741_v24, %v505_v26 }
 0x23e   :  { %v507_v30 = vadd.f32 %v741_v24, %v506_v28 }
 0x240   :  { %v511_v32 = vsel %vm510_vm6, %v741_v24, %v507_v30 }
 0x241   :  { %v516_v34 = vsel %vm513_vm7, %v515_v31, %v511_v32 }
 0x242   :  { %v517_v35 = vmul.f32 %v516_v34, %v502_v33 }
 0x244   :  { %519 = vst.msk [vmem:[%s926_s6] sm:$0x3] %vm518_vm8, %v517_v35 }

</bundles_post_ra>
